<compile_context>
chip_gen: v7x
topology: tpu7x:2x2x1
jax: 0.10.0
libtpu: 0.0.40
codegen_flags: <defaults>
</compile_context>

<pallas_src>
import jax
import jax.numpy as jnp
from jax.experimental import pallas as pl
from jax.experimental.pallas import tpu as pltpu

# "NT" matmul: contract the last dim of lhs with the last dim of rhs
# (i.e. lhs @ rhs.T) -- natively supported by the MXU, result is lane-dense
# over the rhs row axis.
_NT_DIMS = (((1,), (1,)), ((), ()))


def _qmix_easy_kernel(qs_ref, s_ref, w1t_ref, b1_ref, w2_ref, b2_ref, out_ref):
    # s_ref : (row_tile, state_dim)   natural row-major states block
    # qs_ref: (row_tile, n_agents)    natural row-major agent-Q block
    # h^T = W1^T @ s^T  -> (embed, row_tile), f32 accumulate on the MXU.
    h = jax.lax.dot_general(w1t_ref[...], s_ref[...], _NT_DIMS,
                            preferred_element_type=jnp.float32)
    h = jnp.maximum(h + b1_ref[...], 0.0)               # (embed, row_tile)

    # Second layer has output width 1: VPU broadcast-mul + sublane reduce.
    v = jnp.sum(h * w2_ref[...], axis=0, keepdims=True) + b2_ref[...]  # (1, row_tile)

    # Agent-Q sum, produced directly lane-dense via a tiny NT matmul with a
    # ones row (MXU has plenty of slack; avoids any explicit transpose).
    ones = jnp.ones((1, qs_ref.shape[-1]), dtype=qs_ref.dtype)
    q_sum = jax.lax.dot_general(ones, qs_ref[...], _NT_DIMS,
                                preferred_element_type=jnp.float32)     # (1, row_tile)

    out_ref[...] = (q_sum + v).astype(out_ref.dtype)


def qmix_easy_forward(agent_qs, states, params, *, max_row_tile=16384, min_grid=8):
    """agent_qs: (bs, T, n_agents), states: (bs, T, state_dim) -> (bs, T, 1)."""
    w1, b1, w2, b2 = params
    bs, T, n_agents = agent_qs.shape
    state_dim, embed_dim = w1.shape
    n_rows = bs * T

    # Natural layouts straight into the kernel: no wrapper transpose / upcast
    # (each would add a full extra HBM read+write pass on a mem-bound op).
    qs2 = agent_qs.reshape(n_rows, n_agents)
    s2 = states.reshape(n_rows, state_dim)

    # Small resident weights.  W1 goes in transposed and in the states' dtype
    # so the MXU gets matched (e.g. native bf16) operands; post-matmul VPU
    # math stays in f32.
    w1_t = w1.T.astype(s2.dtype)                              # (embed, state_dim)
    b1_c = b1.reshape(embed_dim, 1).astype(jnp.float32)       # (embed, 1)
    w2_c = w2.reshape(embed_dim, 1).astype(jnp.float32)       # (embed, 1)
    b2_c = b2.reshape(1, 1).astype(jnp.float32)               # (1, 1)

    # Row tile: as big as possible (amortizes per-step overhead), multiple of
    # 128, but keep at least `min_grid` grid steps when the input allows so
    # both v7x TensorCores get work and the DMA pipeline overlaps.
    row_tile = pl.cdiv(pl.cdiv(n_rows, min_grid), 128) * 128
    row_tile = max(128, min(max_row_tile, row_tile))

    # Only tiny inputs (n_rows < 128) ever get padded (negligible bytes);
    # larger ragged inputs use Pallas' partial last-block handling -- padded
    # garbage rows stay in their own lanes and are sliced off below.
    n_rows_p = n_rows
    if n_rows < row_tile:
        n_rows_p = row_tile
        qs2 = jnp.pad(qs2, ((0, n_rows_p - n_rows), (0, 0)))
        s2 = jnp.pad(s2, ((0, n_rows_p - n_rows), (0, 0)))

    grid = (pl.cdiv(n_rows_p, row_tile),)

    out = pl.pallas_call(
        _qmix_easy_kernel,
        out_shape=jax.ShapeDtypeStruct((1, n_rows_p), jnp.float32),
        grid_spec=pl.GridSpec(
            grid=grid,
            in_specs=[
                pl.BlockSpec((row_tile, n_agents), lambda i: (i, 0)),    # agent Qs
                pl.BlockSpec((row_tile, state_dim), lambda i: (i, 0)),   # states
                pl.BlockSpec((embed_dim, state_dim), lambda i: (0, 0)),  # W1^T (resident)
                pl.BlockSpec((embed_dim, 1), lambda i: (0, 0)),          # b1
                pl.BlockSpec((embed_dim, 1), lambda i: (0, 0)),          # W2 (column)
                pl.BlockSpec((1, 1), lambda i: (0, 0)),                  # b2
            ],
            out_specs=pl.BlockSpec((1, row_tile), lambda i: (0, i)),     # lane-dense out
        ),
        compiler_params=pltpu.CompilerParams(
            dimension_semantics=("parallel",),
            vmem_limit_bytes=48 * 1024 * 1024),
    )(qs2, s2, w1_t, b1_c, w2_c, b2_c)

    return out[0, :n_rows].reshape(bs, T, 1)


def init_params(key, state_dim, embed_dim):
    # Deterministic init mimicking nn.Linear defaults (uniform +-1/sqrt(fan_in)).
    k1, k2, k3, k4 = jax.random.split(key, 4)
    lim1 = 1.0 / jnp.sqrt(state_dim)
    lim2 = 1.0 / jnp.sqrt(embed_dim)
    w1 = jax.random.uniform(k1, (state_dim, embed_dim), jnp.float32, -lim1, lim1)
    b1 = jax.random.uniform(k2, (1, embed_dim), jnp.float32, -lim1, lim1)
    w2 = jax.random.uniform(k3, (embed_dim, 1), jnp.float32, -lim2, lim2)
    b2 = jax.random.uniform(k4, (1, 1), jnp.float32, -lim2, lim2)
    return w1, b1, w2, b2


def reference_forward(agent_qs, states, params):
    # Pure-JAX f32 reference mirroring the PyTorch module semantics.
    w1, b1, w2, b2 = params
    bs = agent_qs.shape[0]
    s = states.astype(jnp.float32).reshape(-1, w1.shape[0])
    q = agent_qs.astype(jnp.float32).reshape(-1, 1, agent_qs.shape[-1])
    v = (jnp.maximum(s @ w1 + b1, 0.0) @ w2 + b2).reshape(-1, 1, 1)
    q_tot = jnp.sum(q, axis=-1, keepdims=True) + v
    return q_tot.reshape(bs, -1, 1)


if __name__ == "__main__":
    # args: n_agents=4, state_shape=(32,), mixing_embed_dim=32
    n_agents, state_dim, embed_dim = 4, 32, 32

    key = jax.random.PRNGKey(0)
    k_qs, k_st, k_p, k_qs2, k_st2 = jax.random.split(key, 5)
    params = init_params(k_p, state_dim, embed_dim)

    # --- Test 1: f32 path, small shapes (bs=2, T=8) --------------------------
    bs, T = 2, 8
    agent_qs = jax.random.normal(k_qs, (bs, T, n_agents), jnp.float32)
    states = jax.random.normal(k_st, (bs, T, state_dim), jnp.float32)
    out = jax.block_until_ready(qmix_easy_forward(agent_qs, states, params))
    ref = reference_forward(agent_qs, states, params)
    assert out.shape == (bs, T, 1), out.shape
    assert jnp.allclose(out, ref, atol=1e-3, rtol=1e-3), "f32 mismatch vs reference"

    # --- Test 2: bf16 states (recommended path: halves the dominant HBM
    #             stream; MXU runs native bf16, accumulation stays f32) -------
    states_bf16 = states.astype(jnp.bfloat16)
    out_bf = jax.block_until_ready(qmix_easy_forward(agent_qs, states_bf16, params))
    ref_bf = reference_forward(agent_qs, states_bf16, params)
    assert jnp.allclose(out_bf, ref_bf, atol=3e-2, rtol=3e-2), "bf16 mismatch vs reference"

    # --- Test 3: multi-step grid with a ragged last block (no jnp.pad path) --
    bs2, T2 = 4, 250   # 1000 rows -> 8 grid steps of 128 rows, last one ragged
    agent_qs2 = jax.random.normal(k_qs2, (bs2, T2, n_agents), jnp.float32)
    states2 = jax.random.normal(k_st2, (bs2, T2, state_dim), jnp.float32)
    out2 = jax.block_until_ready(qmix_easy_forward(agent_qs2, states2, params))
    ref2 = reference_forward(agent_qs2, states2, params)
    assert out2.shape == (bs2, T2, 1), out2.shape
    assert jnp.allclose(out2, ref2, atol=1e-3, rtol=1e-3), "ragged-grid mismatch vs reference"

    print("KERNEL_OK")
</pallas_src>

<mosaic_0001>
module attributes {stable_mosaic.version = 11 : i64} {
  func.func @_qmix_easy_kernel(%arg0: i32, %arg1: memref<128x4xf32, #tpu.memory_space<vmem>>, %arg2: memref<128x32xf32, #tpu.memory_space<vmem>>, %arg3: memref<32x32xf32, #tpu.memory_space<vmem>>, %arg4: memref<32x1xf32, #tpu.memory_space<vmem>>, %arg5: memref<32x1xf32, #tpu.memory_space<vmem>>, %arg6: memref<1x1xf32, #tpu.memory_space<vmem>>, %arg7: memref<1x128xf32, #tpu.memory_space<vmem>>) attributes {dimension_semantics = [#tpu.dimension_semantics<parallel>], iteration_bounds = array<i64: 1>, scalar_prefetch = 0 : i64, scratch_operands = 0 : i64, tpu.core_type = #tpu.core_type<tc>, window_params = [{transform_indices = @transform_0, window_bounds = array<i64: 128, 4>}, {transform_indices = @transform_1, window_bounds = array<i64: 128, 32>}, {pipeline_mode = #tpu.pipeline_mode<synchronous>, transform_indices = @transform_2, window_bounds = array<i64: 32, 32>}, {pipeline_mode = #tpu.pipeline_mode<synchronous>, transform_indices = @transform_3, window_bounds = array<i64: 32, 1>}, {pipeline_mode = #tpu.pipeline_mode<synchronous>, transform_indices = @transform_4, window_bounds = array<i64: 32, 1>}, {pipeline_mode = #tpu.pipeline_mode<synchronous>, transform_indices = @transform_5, window_bounds = array<i64: 1, 1>}, {transform_indices = @transform_6, window_bounds = array<i64: 1, 128>}]} {
    %c0 = arith.constant 0 : index
    %c0_0 = arith.constant 0 : index
    %0 = vector.load %arg3[%c0, %c0_0] : memref<32x32xf32, #tpu.memory_space<vmem>>, vector<32x32xf32>
    %c0_1 = arith.constant 0 : index
    %c0_2 = arith.constant 0 : index
    %1 = vector.load %arg2[%c0_1, %c0_2] : memref<128x32xf32, #tpu.memory_space<vmem>>, vector<128x32xf32>
    %cst = arith.constant dense<0.000000e+00> : vector<32x128xf32>
    %2 = tpu.matmul %0, %1, %cst {dimension_numbers = #tpu.dot_dimension_numbers<[1], [1], [0], [0], [0, 0, 1, 0], [], []>} : vector<32x32xf32>, vector<128x32xf32>, vector<32x128xf32> -> vector<32x128xf32>
    %c0_3 = arith.constant 0 : index
    %c0_4 = arith.constant 0 : index
    %3 = vector.load %arg4[%c0_3, %c0_4] : memref<32x1xf32, #tpu.memory_space<vmem>>, vector<32x1xf32>
    %4 = vector.broadcast %3 : vector<32x1xf32> to vector<32x128xf32>
    %5 = arith.addf %2, %4 : vector<32x128xf32>
    %cst_5 = arith.constant 0.000000e+00 : f32
    %6 = vector.broadcast %cst_5 : f32 to vector<32x128xf32>
    %7 = arith.maximumf %5, %6 : vector<32x128xf32>
    %c0_6 = arith.constant 0 : index
    %c0_7 = arith.constant 0 : index
    %8 = vector.load %arg5[%c0_6, %c0_7] : memref<32x1xf32, #tpu.memory_space<vmem>>, vector<32x1xf32>
    %9 = vector.broadcast %8 : vector<32x1xf32> to vector<32x128xf32>
    %10 = arith.mulf %7, %9 : vector<32x128xf32>
    %cst_8 = arith.constant dense<0.000000e+00> : vector<128xf32>
    %11 = vector.multi_reduction <add>, %10, %cst_8 [0] : vector<32x128xf32> to vector<128xf32>
    %12 = vector.shape_cast %11 : vector<128xf32> to vector<1x128xf32>
    %c0_9 = arith.constant 0 : index
    %c0_10 = arith.constant 0 : index
    %13 = vector.load %arg6[%c0_9, %c0_10] : memref<1x1xf32, #tpu.memory_space<vmem>>, vector<1x1xf32>
    %14 = vector.broadcast %13 : vector<1x1xf32> to vector<1x128xf32>
    %15 = arith.addf %12, %14 : vector<1x128xf32>
    %cst_11 = arith.constant 1.000000e+00 : f32
    %16 = vector.broadcast %cst_11 : f32 to vector<1x4xf32>
    %c0_12 = arith.constant 0 : index
    %c0_13 = arith.constant 0 : index
    %17 = vector.load %arg1[%c0_12, %c0_13] : memref<128x4xf32, #tpu.memory_space<vmem>>, vector<128x4xf32>
    %cst_14 = arith.constant dense<0.000000e+00> : vector<1x128xf32>
    %18 = tpu.matmul %16, %17, %cst_14 {dimension_numbers = #tpu.dot_dimension_numbers<[1], [1], [0], [0], [0, 0, 1, 0], [], []>} : vector<1x4xf32>, vector<128x4xf32>, vector<1x128xf32> -> vector<1x128xf32>
    %19 = arith.addf %18, %15 : vector<1x128xf32>
    %c0_15 = arith.constant 0 : index
    %c0_16 = arith.constant 0 : index
    %20 = vector.load %arg7[%c0_15, %c0_16] : memref<1x128xf32, #tpu.memory_space<vmem>>, vector<1x128xf32>
    tpu.vector_store %arg7[%c0_15, %c0_16], %19 {strides = array<i32>} : memref<1x128xf32, #tpu.memory_space<vmem>>, vector<1x128xf32>,
    return
  }
  func.func @transform_0(%arg0: i32) -> (i32, i32) {
    %c0_i32 = arith.constant 0 : i32
    %c0_i32_0 = arith.constant 0 : i32
    return %arg0, %c0_i32 : i32, i32
  }
  func.func @transform_1(%arg0: i32) -> (i32, i32) {
    %c0_i32 = arith.constant 0 : i32
    %c0_i32_0 = arith.constant 0 : i32
    return %arg0, %c0_i32 : i32, i32
  }
  func.func @transform_2(%arg0: i32) -> (i32, i32) {
    %c0_i32 = arith.constant 0 : i32
    %c0_i32_0 = arith.constant 0 : i32
    %c0_i32_1 = arith.constant 0 : i32
    return %c0_i32, %c0_i32_0 : i32, i32
  }
  func.func @transform_3(%arg0: i32) -> (i32, i32) {
    %c0_i32 = arith.constant 0 : i32
    %c0_i32_0 = arith.constant 0 : i32
    %c0_i32_1 = arith.constant 0 : i32
    return %c0_i32, %c0_i32_0 : i32, i32
  }
  func.func @transform_4(%arg0: i32) -> (i32, i32) {
    %c0_i32 = arith.constant 0 : i32
    %c0_i32_0 = arith.constant 0 : i32
    %c0_i32_1 = arith.constant 0 : i32
    return %c0_i32, %c0_i32_0 : i32, i32
  }
  func.func @transform_5(%arg0: i32) -> (i32, i32) {
    %c0_i32 = arith.constant 0 : i32
    %c0_i32_0 = arith.constant 0 : i32
    %c0_i32_1 = arith.constant 0 : i32
    return %c0_i32, %c0_i32_0 : i32, i32
  }
  func.func @transform_6(%arg0: i32) -> (i32, i32) {
    %c0_i32 = arith.constant 0 : i32
    %c0_i32_0 = arith.constant 0 : i32
    return %c0_i32, %arg0 : i32, i32
  }
}

</mosaic_0001>

<bundles_post_ra>
// kernel: tpu_custom_call.1
= control target key start
LH: loop header
LB: loop body
LE: loop exit
PB: predicated region body
PF: predicated region fallthrough
CT: control target
= control target key end

     0   :  { %s941_s0 = inlined_call_operand.vmem [shape: f32[128,4], index: 0, kind: input, shape index: {}]   ;;  %s942_s1 = inlined_call_operand.vmem [shape: f32[128,32], index: 1, kind: input, shape index: {}]   ;;  %s943_s2 = inlined_call_operand.vmem [shape: f32[32,32], index: 2, kind: input, shape index: {}]   ;;  %s944_s3 = inlined_call_operand.vmem [shape: f32[32,1], index: 3, kind: input, shape index: {}]   ;;  %s945_s4 = inlined_call_operand.vmem [shape: f32[32,1], index: 4, kind: input, shape index: {}]   ;;  %s946_s5 = inlined_call_operand.<no memory space> [shape: f32[1,1], index: 5, kind: input, shape index: {}]   ;;  %s947_s6 = inlined_call_operand.hbm [shape: f32[1,128], index: 6, kind: output, shape index: {}]  }
   0x1   :  { %v11_v0 = vstv %s946_s5 }
   0x2   :  { %12 = vst [vmem:[#allocation2] sm:$0x1] %v11_v0 }
   0x3   :  { %v30_v1 = vld [vmem:[%s942_s1] sm:$0xff]  ;;  %v31_v2 = vld [vmem:[%s942_s1 + $0x8] sm:$0xff]  ;;  %vm70_vm0 = vcmask 261120   ;;  %v32_v3 = vld [vmem:[%s942_s1 + $0x10] sm:$0xff]  ;;  %vm284_vm1 = vcmask 31744   ;;  %v680_v7 = vmov 0.0|0.0  }
   0x4   :  { %v568_v4 = vpack.c.bf16 %v31_v2, %v30_v1  ;;  %vm735_vm2 = vmpackc.low %vm70_vm0, %vm70_vm0  ;;  %v33_v6 = vld [vmem:[%s942_s1 + $0x18] sm:$0xff]  ;;  %616 = vmatprep.subr.bf16.mxu1 %v680_v7  ;;  %vm681_vm3 = vmmov 0   ;;  %v682_v9 = vmov 0.0   ;;  %v268_v10 = vld [vmem:[%s941_s0] sm:$0xff]  ;;  %v683_v13 = vmov 0  }
   0x5   :  { %v574_v8 = vpack.c.bf16 %v33_v6, %v32_v3  ;;  %565 = vmatprep.mubr.msk.f32.mxu1 %vm681_vm3, %v682_v9  ;;  %v269_v11 = vld [vmem:[%s941_s0 + $0x8] sm:$0xff]  ;;  %vm753_vm4 = vmpackc.low %vm284_vm1, %vm284_vm1  ;;  %654 = vset.pattern.permute.xlu0 %v683_v13  ;;  %v34_v15 = vld [vmem:[%s942_s1 + $0x20] sm:$0xff] }
   0x6   :  { %570 = vmatprep.subr.msk.bf16.mxu0 %vm735_vm2, %v568_v4  ;;  %v617_v14 = vpack.c.bf16 %v269_v11, %v268_v10  ;;  %655 = vset.pattern.permute.xlu1 %v683_v13  ;;  %v35_v16 = vld [vmem:[%s942_s1 + $0x28] sm:$0xff]  ;;  %v270_v17 = vld [vmem:[%s941_s0 + $0x10] sm:$0xff]  ;;  %v271_v18 = vld [vmem:[%s941_s0 + $0x18] sm:$0xff] }
   0x7   :  { %573 = vmatpush3.bf16.xpose.msk.msra.mxu0 %vm735_vm2, %v568_v4  ;;  %v580_v19 = vpack.c.bf16 %v35_v16, %v34_v15  ;;  %v26_v20 = vld [vmem:[%s943_s2] sm:$0xff]  ;;  %v621_v21 = vpack.c.bf16 %v271_v18, %v270_v17  ;;  %v36_v23 = vld [vmem:[%s942_s1 + $0x30] sm:$0xff]  ;;  %v37_v25 = vld [vmem:[%s942_s1 + $0x38] sm:$0xff] }
   0x8   :  { %576 = vmatprep.subr.msk.bf16.mxu0 %vm735_vm2, %v574_v8  ;;  %619 = vmatpush3.bf16.xpose.msk.msra.mxu1 %vm753_vm4, %v617_v14  ;;  %v46_v22 = vld [vmem:[%s944_s3] sm:$0xff]  ;;  %v48_v24 = vld [vmem:[%s944_s3 + $0x10] sm:$0xff]  ;;  %v47_v27 = vld [vmem:[%s944_s3 + $0x8] sm:$0xff] }
   0x9   :  { %620 = vmatprep.subr.bf16.mxu1 %v680_v7  ;;  %527 = vmatprep.mubr.msk.f32.mxu0 %vm70_vm0, %v26_v20  ;;  %v272_v26 = vld [vmem:[%s941_s0 + $0x20] sm:$0xff]  ;;  %v273_v28 = vld [vmem:[%s941_s0 + $0x28] sm:$0xff]  ;;  %v49_v29 = vld [vmem:[%s944_s3 + $0x18] sm:$0xff] }
   0xa   :  { %52 = vperm.xlu0 %654, %v46_v22   ;;  %62 = vperm.xlu1 %655, %v48_v24  }
   0xf   :  { %579 = vmatpush3.bf16.xpose.msk.msra.mxu0 %vm735_vm2, %v574_v8 }
  0x10   :  { %582 = vmatprep.subr.msk.bf16.mxu0 %vm735_vm2, %v580_v19  ;;  %623 = vmatpush3.bf16.xpose.msk.msra.mxu1 %vm753_vm4, %v621_v21 }
  0x11   :  { %624 = vmatprep.subr.bf16.mxu1 %v680_v7 }
  0x12   :  { %13 = vsyncpa [#allocation4], 0  ;;  %v586_v30 = vpack.c.bf16 %v37_v25, %v36_v23  ;;  %57 = vperm.xlu0 %654, %v47_v27   ;;  %v625_v31 = vpack.c.bf16 %v273_v28, %v272_v26  ;;  %v220_v32 = vld [vmem:[%s945_s4] sm:$0xff]  ;;  %67 = vperm.xlu1 %655, %v49_v29   ;;  %v221_v33 = vld [vmem:[%s945_s4 + $0x8] sm:$0xff]  ;;  %v684_v3 = vmov 1.0  }
  0x13   :  { %v38_v34 = vld [vmem:[%s942_s1 + $0x40] sm:$0xff]  ;;  %v39_v35 = vld [vmem:[%s942_s1 + $0x48] sm:$0xff]  ;;  %v222_v36 = vld [vmem:[%s945_s4 + $0x10] sm:$0xff] }
  0x14   :  { %v274_v37 = vld [vmem:[%s941_s0 + $0x30] sm:$0xff]  ;;  %v275_v38 = vld [vmem:[%s941_s0 + $0x38] sm:$0xff]  ;;  %v592_v40 = vpack.c.bf16 %v39_v35, %v38_v34  ;;  %v257_v42 = vld [vmem:[#allocation2] sm:$0x1] }
  0x15   :  { %v223_v39 = vld [vmem:[%s945_s4 + $0x18] sm:$0xff]  ;;  %v629_v41 = vpack.c.bf16 %v275_v38, %v274_v37  ;;  %v40_v43 = vld [vmem:[%s942_s1 + $0x50] sm:$0xff]  ;;  %v276_v45 = vld [vmem:[%s941_s0 + $0x40] sm:$0xff] }
  0x16   :  { %226 = vperm.xlu0 %654, %v220_v32   ;;  %231 = vperm.xlu1 %655, %v221_v33   ;;  %v41_v44 = vld [vmem:[%s942_s1 + $0x58] sm:$0xff]  ;;  %v277_v46 = vld [vmem:[%s941_s0 + $0x48] sm:$0xff]  ;;  %v42_v49 = vld [vmem:[%s942_s1 + $0x60] sm:$0xff]  ;;  %v263_v32 = vlaneseq }
  0x17   :  { %585 = vmatpush3.bf16.xpose.msk.msra.mxu0 %vm735_vm2, %v580_v19  ;;  %v598_v47 = vpack.c.bf16 %v41_v44, %v40_v43  ;;  %v633_v48 = vpack.c.bf16 %v277_v46, %v276_v45  ;;  %v43_v50 = vld [vmem:[%s942_s1 + $0x68] sm:$0xff]  ;;  %v278_v51 = vld [vmem:[%s941_s0 + $0x50] sm:$0xff]  ;;  %v279_v52 = vld [vmem:[%s941_s0 + $0x58] sm:$0xff] }
  0x18   :  { %588 = vmatprep.subr.msk.bf16.mxu0 %vm735_vm2, %v586_v30  ;;  %627 = vmatpush3.bf16.xpose.msk.msra.mxu1 %vm753_vm4, %v625_v31  ;;  %v604_v53 = vpack.c.bf16 %v43_v50, %v42_v49  ;;  %v637_v54 = vpack.c.bf16 %v279_v52, %v278_v51  ;;  %v44_v55 = vld [vmem:[%s942_s1 + $0x70] sm:$0xff]  ;;  %v45_v56 = vld [vmem:[%s942_s1 + $0x78] sm:$0xff]  ;;  %v280_v57 = vld [vmem:[%s941_s0 + $0x60] sm:$0xff]  ;;  %v264_v35 = vshrl.u32 %v263_v32, 7 }
  0x19   :  { %628 = vmatprep.subr.bf16.mxu1 %v680_v7  ;;  %v281_v58 = vld [vmem:[%s941_s0 + $0x68] sm:$0xff]  ;;  %v610_v59 = vpack.c.bf16 %v45_v56, %v44_v55  ;;  %v282_v61 = vld [vmem:[%s941_s0 + $0x70] sm:$0xff]  ;;  %v283_v62 = vld [vmem:[%s941_s0 + $0x78] sm:$0xff] }
  0x1a   :  { %236 = vperm.xlu0 %654, %v222_v36   ;;  %241 = vperm.xlu1 %655, %v223_v39   ;;  %v641_v60 = vpack.c.bf16 %v281_v58, %v280_v57  ;;  %v645_v63 = vpack.c.bf16 %v283_v62, %v282_v61  ;;  %v27_v0 = vld [vmem:[%s943_s2 + $0x8] sm:$0xff]  ;;  %v28_v1 = vld [vmem:[%s943_s2 + $0x10] sm:$0xff]  ;;  %v29_v2 = vld [vmem:[%s943_s2 + $0x18] sm:$0xff]  ;;  %v265_v38 = vsub.s32 0, %v264_v35  ;;  %s685_s2 = smov [#allocation3]  }
  0x1b   :  { %s413_s29 = sshll.u32 %s685_s2, 4  ;;  %s414_s29 = int_to_ptr.vmem [resolvable:$true] %s413_s29 }
  0x1c   :  { %s656_s30 = scalar_lea.vmem %s414_s29, 16  ;;  %s660_s7 = scalar_lea.vmem %s414_s29, 32 }
  0x1d   :  { %p657_p0 = scmp.ne.s32.totalorder %s414_s29, %s656_s30  ;;  %p661_p1 = scmp.lt.s32.totalorder %s414_s29, %s414_s29 }
  0x1e   :  { %260 = vperm.xlu0 %654, %v257_v42   ;;  %p662_p2 = scmp.lt.s32.totalorder %s660_s7, %s656_s30 }
  0x1f   :  { %591 = vmatpush3.bf16.xpose.msk.msra.mxu0 %vm735_vm2, %v586_v30 }
  0x20   :  { %594 = vmatprep.subr.msk.bf16.mxu0 %vm735_vm2, %v592_v40  ;;  %631 = vmatpush3.bf16.xpose.msk.msra.mxu1 %vm753_vm4, %v629_v41  ;;  %p663_p3 = por %p662_p2, %p661_p1 }
  0x21   :  { %632 = vmatprep.subr.bf16.mxu1 %v680_v7 }
  0x22   :  { %p664_p4 = pnand %p663_p3, %p657_p0 }
  0x27   :  { %597 = vmatpush3.bf16.xpose.msk.msra.mxu0 %vm735_vm2, %v592_v40 }
  0x28   :  { %600 = vmatprep.subr.msk.bf16.mxu0 %vm735_vm2, %v598_v47  ;;  %635 = vmatpush3.bf16.xpose.msk.msra.mxu1 %vm753_vm4, %v633_v48 }
  0x29   :  { %636 = vmatprep.subr.bf16.mxu1 %v680_v7 }
  0x2f   :  { %603 = vmatpush3.bf16.xpose.msk.msra.mxu0 %vm735_vm2, %v598_v47 }
  0x30   :  { %606 = vmatprep.subr.msk.bf16.mxu0 %vm735_vm2, %v604_v53  ;;  %639 = vmatpush3.bf16.xpose.msk.msra.mxu1 %vm753_vm4, %v637_v54 }
  0x31   :  { %640 = vmatprep.subr.bf16.mxu1 %v680_v7 }
  0x37   :  { %609 = vmatpush3.bf16.xpose.msk.msra.mxu0 %vm735_vm2, %v604_v53 }
  0x38   :  { %612 = vmatprep.subr.msk.bf16.mxu0 %vm735_vm2, %v610_v59  ;;  %643 = vmatpush3.bf16.xpose.msk.msra.mxu1 %vm753_vm4, %v641_v60 }
  0x39   :  { %644 = vmatprep.subr.bf16.mxu1 %v680_v7 }
  0x3f   :  { %615 = vmatpush3.bf16.xpose.msk.msra.mxu0 %vm735_vm2, %v610_v59 }
  0x40   :  { %647 = vmatpush3.bf16.xpose.msk.msra.mxu1 %vm753_vm4, %v645_v63 }
  0x46   :  { %528 = vmatmul.mubr.msk.f32.vlgmr.msra.gmra.mrb[0].mxu0 %vm70_vm0, %v27_v0 }
  0x47   :  { %530 = vmatprep.mubr.msk.f32.mxu0 %vm70_vm0, %v28_v1  ;;  %566 = vmatmul.mubr.msk.f32.vlgmr.msra.gmra.mrb[0].mxu1 %vm284_vm1, %v684_v3 }
  0x4a   :  { %531 = vmatmul.mubr.msk.f32.gmra.mrb[2].mxu0 %vm70_vm0, %v29_v2 }
  0x89   :  { %v53_v4 = vpop.permute.xlu0 %52  ;;  %v63_v5 = vpop.permute.xlu1 %62 }
  0x91   :  { %v58_v6 = vpop.permute.xlu0 %57  ;;  %v68_v7 = vpop.permute.xlu1 %67 }
  0x95   :  { %v227_v13 = vpop.permute.xlu0 %226  ;;  %v232_v16 = vpop.permute.xlu1 %231 }
  0x99   :  { %v237_v27 = vpop.permute.xlu0 %236  ;;  %v242_v29 = vpop.permute.xlu1 %241 }
  0x9d   :  { %v261_v40 = vpop.permute.xlu0 %260 }
  0x9e   :  { %v266_v42 = vrot.slane %v261_v40, %v265_v38 }
 0x119   :  { %v529_v8 = vpop.f32.mrb[0].mxu0 }
 0x11a   :  { %v203_v9 = vadd.f32 %v529_v8, %v58_v6  ;;  %v197_v10 = vpop.f32.mrb[1].mxu0  ;;  %v402_v12 = vpop.f32.mrb[0].mxu1 }
 0x11b   :  { %v198_v11 = vadd.f32 %v197_v10, %v53_v4  ;;  %v567_v15 = vpop.f32.mrb[1].mxu1 }
 0x11c   :  { %v217_v14 = vmax.f32 %v203_v9, 0.0 }
 0x11d   :  { %v216_v17 = vmax.f32 %v198_v11, 0.0  ;;  %v532_v18 = vpop.f32.mrb[2].mxu0 }
 0x11e   :  { %v245_v19 = vmul.f32 %v232_v16, %v217_v14  ;;  %v213_v20 = vadd.f32 %v532_v18, %v68_v7  ;;  %v207_v21 = vpop.f32.mrb[3].mxu0 }
 0x11f   :  { %v244_v22 = vmul.f32 %v227_v13, %v216_v17  ;;  %v208_v23 = vadd.f32 %v207_v21, %v63_v5 }
 0x120   :  { %v219_v25 = vmax.f32 %v213_v20, 0.0 }
 0x121   :  { %v248_v24 = vadd.f32 %v245_v19, %v244_v22  ;;  %v218_v26 = vmax.f32 %v208_v23, 0.0 }
 0x122   :  { %v247_v30 = vmul.f32 %v242_v29, %v219_v25 }
 0x123   :  { %v246_v28 = vmul.f32 %v237_v27, %v218_v26 }
 0x125   :  { %v249_v31 = vadd.f32 %v248_v24, %v246_v28 }
 0x127   :  { %v250_v33 = vadd.f32 %v249_v31, %v247_v30 }
 0x129   :  { %v251_v34 = vrot.slane %v250_v33, 4 }
 0x12b   :  { %v252_v36 = vadd.f32 %v251_v34, %v250_v33 }
 0x12d   :  { %v253_v37 = vrot.slane %v252_v36, 2 }
 0x12f   :  { %v254_v39 = vadd.f32 %v253_v37, %v252_v36 }
 0x131   :  { %v255_v41 = vrot.slane %v254_v39, 1 }
 0x133   :  { %v256_v43 = vadd.f32 %v255_v41, %v254_v39 }
 0x135   :  { %v267_v44 = vadd.f32 %v266_v42, %v256_v43 }
 0x137   :  { %v403_v45 = vadd.f32 %v402_v12, %v267_v44 }
 0x139   :  { %406 = vst [vmem:[#allocation3] sm:$0x1] %v403_v45 }
 0x13a   :  { %667 = shalt.err (!%p664_p4)
}
 0x13b   :  { %s668_s10 = scalar_lea.hbm %s947_s6, 16 }
 0x13c   :  { %p669_p5 = scmp.ne.s32.totalorder %s947_s6, %s668_s10  ;;  %p672_p6 = scmp.lt.u32.totalorder %s668_s10, %s947_s6 }
 0x13e   :  { %p674_p7 = pnand %p672_p6, %p669_p5 }
 0x140   :  { %677 = shalt.err (!%p674_p7)
}
 0x141   :  { %416 = dma.vmem_to_hbm [thread:$0]  %s414_s29, 16, %s947_s6, [#allocation4]  }
 0x142   :  { %678 = dma.done.wait [#allocation4], 16  }
 0x143   :  { %679 = vsyncadd [#allocation4], 4294967280 }
 0x144   :  { %420 = vsyncpa [#allocation4], 1 }

</bundles_post_ra>
